<compile_context>
chip_gen: v7x
topology: tpu7x:2x2x1
jax: 0.10.0
libtpu: 0.0.40
codegen_flags: <defaults>
</compile_context>

<pallas_src>
import jax
import jax.numpy as jnp
from jax.experimental import pallas as pl
from jax.experimental.pallas import tpu as pltpu


def dff_tiny_kernel(x_ref, w1_ref, b1_ref, w2_ref, b2_ref, o_ref):
    # x block: (TB, 784) f32 in VMEM; cast to bf16 in registers for the MXU.
    x = x_ref[...].astype(jnp.bfloat16)

    h1 = jnp.dot(x, w1_ref[...], preferred_element_type=jnp.float32) + b1_ref[...]
    h1 = jnp.maximum(h1, 0.0)                                        # (TB, 10) f32

    logits = (
        jnp.dot(h1.astype(w2_ref.dtype), w2_ref[...],
                preferred_element_type=jnp.float32)
        + b2_ref[...]
    )                                                                # (TB, 10) f32

    # Numerically stable softmax over dim=1.
    m = jnp.max(logits, axis=-1, keepdims=True)                      # XLU (kept)
    e = jnp.exp(logits - m)
    # Row-sum on the MXU (otherwise a lane-sparse XLU reduce is the exposed
    # tail on v7x where the DMA no longer hides it); MXU is otherwise idle.
    ones = jnp.ones((10, 1), dtype=jnp.bfloat16)
    s = jnp.dot(e.astype(jnp.bfloat16), ones,
                preferred_element_type=jnp.float32)                  # (TB, 1) f32
    o_ref[...] = e * pl.reciprocal(s, approx=True)                   # (TB, 10)


def dff_tiny_forward(x, params, *, tb_max=2048):
    """x: (B, 1, 28, 28) (or anything that flattens row-major to (B, 784)).

    tb_max: batch tile. 2048 keeps the double-buffered f32 input tile
    (~13 MB) inside every generation's scoped-VMEM default; on v6e/v7x a
    sweep of 4096 is worth trying (bump vmem_limit_bytes accordingly).
    """
    w1, b1, w2, b2 = params

    # No staging copies of x in the wrapper: flatten only (view-like), keep f32.
    x2d = x.reshape(-1, 28 * 28)
    B = x2d.shape[0]

    # Weights are tiny and VMEM-resident -> stage them as bf16 once.
    w1b = w1.astype(jnp.bfloat16)
    w2b = w2.astype(jnp.bfloat16)
    b1f = b1.astype(jnp.float32)
    b2f = b2.astype(jnp.float32)

    # Batch tile: multiple of 8 (f32 sublane tiling), capped at tb_max.
    tb = min(tb_max, ((B + 7) // 8) * 8)
    n_blocks = pl.cdiv(B, tb)  # ragged final block handled by Pallas masking

    # VMEM budget: double-buffered f32 input tile dominates; + output + margin.
    vmem_bytes = 2 * tb * 784 * 4 + 2 * tb * 10 * 4 + (1 << 22)

    out = pl.pallas_call(
        dff_tiny_kernel,
        out_shape=jax.ShapeDtypeStruct((B, 10), jnp.float32),
        grid=(n_blocks,),
        in_specs=[
            pl.BlockSpec((tb, 784), lambda i: (i, 0)),   # x: tiled over batch
            pl.BlockSpec((784, 10), lambda i: (0, 0)),   # w1: resident
            pl.BlockSpec((1, 10), lambda i: (0, 0)),     # b1: resident
            pl.BlockSpec((10, 10), lambda i: (0, 0)),    # w2: resident
            pl.BlockSpec((1, 10), lambda i: (0, 0)),     # b2: resident
        ],
        out_specs=pl.BlockSpec((tb, 10), lambda i: (i, 0)),
        compiler_params=pltpu.CompilerParams(
            # TODO(synk): on v7x, verify in a trace that the batch axis runs on
            # both TensorCores; if one TC is idle, switch to
            # pltpu.CORE_PARALLEL (plain "parallel" barely changes codegen).
            dimension_semantics=("parallel",),
            vmem_limit_bytes=vmem_bytes,
        ),
    )(x2d, w1b, b1f, w2b, b2f)

    return out


def init_params(key):
    """Deterministic init mimicking nn.Linear's U(-1/sqrt(fan_in), +1/sqrt(fan_in)).
    Weights are stored as (in_features, out_features)."""
    dims = [(784, 10), (10, 10)]
    params = []
    for (fan_in, fan_out) in dims:
        key, kw, kb = jax.random.split(key, 3)
        bound = 1.0 / jnp.sqrt(fan_in)
        w = jax.random.uniform(kw, (fan_in, fan_out), jnp.float32, -bound, bound)
        b = jax.random.uniform(kb, (1, fan_out), jnp.float32, -bound, bound)
        params += [w, b]
    return tuple(params)


def dff_tiny_reference(x, params):
    """Pure-JAX f32 reference for correctness checking."""
    w1, b1, w2, b2 = params
    x2d = x.reshape(-1, 28 * 28).astype(jnp.float32)
    h1 = jax.nn.relu(x2d @ w1 + b1)
    return jax.nn.softmax(h1 @ w2 + b2, axis=1)


if __name__ == "__main__":
    key = jax.random.PRNGKey(0)
    kx, kp = jax.random.split(key)

    # Small batch; spatial dims fixed at 28x28 by the module definition.
    x = jax.random.normal(kx, (2, 1, 28, 28), dtype=jnp.float32)
    params = init_params(kp)

    out = dff_tiny_forward(x, params)
    out = jax.block_until_ready(out)

    ref = dff_tiny_reference(x, params)
    assert out.shape == (2, 10)
    # rows sum to ~1 (softmax; approx reciprocal + bf16 row-sum -> loose tol)
    assert jnp.allclose(jnp.sum(out, axis=1), 1.0, atol=1e-2)
    # kernel matches the f32 pure-JAX reference within bf16 tolerance
    assert jnp.allclose(out, ref, atol=2e-2, rtol=2e-2)

    print("KERNEL_OK")
</pallas_src>

<mosaic_0001>
module attributes {stable_mosaic.version = 11 : i64} {
  func.func @dff_tiny_kernel(%arg0: i32, %arg1: memref<8x784xf32, #tpu.memory_space<vmem>>, %arg2: memref<784x10xbf16, #tpu.memory_space<vmem>>, %arg3: memref<1x10xf32, #tpu.memory_space<vmem>>, %arg4: memref<10x10xbf16, #tpu.memory_space<vmem>>, %arg5: memref<1x10xf32, #tpu.memory_space<vmem>>, %arg6: memref<8x10xf32, #tpu.memory_space<vmem>>) attributes {dimension_semantics = [#tpu.dimension_semantics<parallel>], iteration_bounds = array<i64: 1>, scalar_prefetch = 0 : i64, scratch_operands = 0 : i64, tpu.core_type = #tpu.core_type<tc>, window_params = [{transform_indices = @transform_0, window_bounds = array<i64: 8, 784>}, {pipeline_mode = #tpu.pipeline_mode<synchronous>, transform_indices = @transform_1, window_bounds = array<i64: 784, 10>}, {pipeline_mode = #tpu.pipeline_mode<synchronous>, transform_indices = @transform_2, window_bounds = array<i64: 1, 10>}, {pipeline_mode = #tpu.pipeline_mode<synchronous>, transform_indices = @transform_3, window_bounds = array<i64: 10, 10>}, {pipeline_mode = #tpu.pipeline_mode<synchronous>, transform_indices = @transform_4, window_bounds = array<i64: 1, 10>}, {transform_indices = @transform_5, window_bounds = array<i64: 8, 10>}]} {
    %c0 = arith.constant 0 : index
    %c0_0 = arith.constant 0 : index
    %0 = vector.load %arg1[%c0, %c0_0] : memref<8x784xf32, #tpu.memory_space<vmem>>, vector<8x784xf32>
    %1 = arith.truncf %0 : vector<8x784xf32> to vector<8x784xbf16>
    %c0_1 = arith.constant 0 : index
    %c0_2 = arith.constant 0 : index
    %2 = vector.load %arg2[%c0_1, %c0_2] : memref<784x10xbf16, #tpu.memory_space<vmem>>, vector<784x10xbf16>
    %cst = arith.constant dense<0.000000e+00> : vector<8x10xf32>
    %3 = tpu.matmul %1, %2, %cst {dimension_numbers = #tpu.dot_dimension_numbers<[1], [0], [0], [1], [0, 0, 1, 1], [], []>} : vector<8x784xbf16>, vector<784x10xbf16>, vector<8x10xf32> -> vector<8x10xf32>
    %c0_3 = arith.constant 0 : index
    %c0_4 = arith.constant 0 : index
    %4 = vector.load %arg3[%c0_3, %c0_4] : memref<1x10xf32, #tpu.memory_space<vmem>>, vector<1x10xf32>
    %5 = vector.broadcast %4 : vector<1x10xf32> to vector<8x10xf32>
    %6 = arith.addf %3, %5 : vector<8x10xf32>
    %cst_5 = arith.constant 0.000000e+00 : f32
    %7 = vector.broadcast %cst_5 : f32 to vector<8x10xf32>
    %8 = arith.maximumf %6, %7 : vector<8x10xf32>
    %9 = arith.truncf %8 : vector<8x10xf32> to vector<8x10xbf16>
    %c0_6 = arith.constant 0 : index
    %c0_7 = arith.constant 0 : index
    %10 = vector.load %arg4[%c0_6, %c0_7] : memref<10x10xbf16, #tpu.memory_space<vmem>>, vector<10x10xbf16>
    %cst_8 = arith.constant dense<0.000000e+00> : vector<8x10xf32>
    %11 = tpu.matmul %9, %10, %cst_8 {dimension_numbers = #tpu.dot_dimension_numbers<[1], [0], [0], [1], [0, 0, 1, 1], [], []>} : vector<8x10xbf16>, vector<10x10xbf16>, vector<8x10xf32> -> vector<8x10xf32>
    %c0_9 = arith.constant 0 : index
    %c0_10 = arith.constant 0 : index
    %12 = vector.load %arg5[%c0_9, %c0_10] : memref<1x10xf32, #tpu.memory_space<vmem>>, vector<1x10xf32>
    %13 = vector.broadcast %12 : vector<1x10xf32> to vector<8x10xf32>
    %14 = arith.addf %11, %13 : vector<8x10xf32>
    %cst_11 = arith.constant dense<0xFF800000> : vector<8xf32>
    %15 = vector.multi_reduction <maximumf>, %14, %cst_11 [1] : vector<8x10xf32> to vector<8xf32>
    %16 = vector.shape_cast %15 : vector<8xf32> to vector<8x1xf32>
    %17 = vector.broadcast %16 : vector<8x1xf32> to vector<8x10xf32>
    %18 = arith.subf %14, %17 : vector<8x10xf32>
    %19 = math.exp %18 : vector<8x10xf32>
    %cst_12 = arith.constant 1.000000e+00 : bf16
    %20 = vector.broadcast %cst_12 : bf16 to vector<10x1xbf16>
    %21 = arith.truncf %19 : vector<8x10xf32> to vector<8x10xbf16>
    %cst_13 = arith.constant dense<0.000000e+00> : vector<8x1xf32>
    %22 = tpu.matmul %21, %20, %cst_13 {dimension_numbers = #tpu.dot_dimension_numbers<[1], [0], [0], [1], [0, 0, 1, 1], [], []>} : vector<8x10xbf16>, vector<10x1xbf16>, vector<8x1xf32> -> vector<8x1xf32>
    %23 = tpu.reciprocal %22 {approx = true} : vector<8x1xf32> -> vector<8x1xf32>
    %24 = vector.broadcast %23 : vector<8x1xf32> to vector<8x10xf32>
    %25 = arith.mulf %19, %24 : vector<8x10xf32>
    %c0_14 = arith.constant 0 : index
    %c0_15 = arith.constant 0 : index
    %26 = vector.load %arg6[%c0_14, %c0_15] : memref<8x10xf32, #tpu.memory_space<vmem>>, vector<8x10xf32>
    tpu.vector_store %arg6[%c0_14, %c0_15], %25 {strides = array<i32>} : memref<8x10xf32, #tpu.memory_space<vmem>>, vector<8x10xf32>,
    return
  }
  func.func @transform_0(%arg0: i32) -> (i32, i32) {
    %c0_i32 = arith.constant 0 : i32
    %c0_i32_0 = arith.constant 0 : i32
    return %arg0, %c0_i32 : i32, i32
  }
  func.func @transform_1(%arg0: i32) -> (i32, i32) {
    %c0_i32 = arith.constant 0 : i32
    %c0_i32_0 = arith.constant 0 : i32
    %c0_i32_1 = arith.constant 0 : i32
    return %c0_i32, %c0_i32_0 : i32, i32
  }
  func.func @transform_2(%arg0: i32) -> (i32, i32) {
    %c0_i32 = arith.constant 0 : i32
    %c0_i32_0 = arith.constant 0 : i32
    %c0_i32_1 = arith.constant 0 : i32
    return %c0_i32, %c0_i32_0 : i32, i32
  }
  func.func @transform_3(%arg0: i32) -> (i32, i32) {
    %c0_i32 = arith.constant 0 : i32
    %c0_i32_0 = arith.constant 0 : i32
    %c0_i32_1 = arith.constant 0 : i32
    return %c0_i32, %c0_i32_0 : i32, i32
  }
  func.func @transform_4(%arg0: i32) -> (i32, i32) {
    %c0_i32 = arith.constant 0 : i32
    %c0_i32_0 = arith.constant 0 : i32
    %c0_i32_1 = arith.constant 0 : i32
    return %c0_i32, %c0_i32_0 : i32, i32
  }
  func.func @transform_5(%arg0: i32) -> (i32, i32) {
    %c0_i32 = arith.constant 0 : i32
    %c0_i32_0 = arith.constant 0 : i32
    return %arg0, %c0_i32 : i32, i32
  }
}

</mosaic_0001>

<bundles_post_ra>
// kernel: tpu_custom_call.1
= control target key start
LH: loop header
LB: loop body
LE: loop exit
PB: predicated region body
PF: predicated region fallthrough
CT: control target
= control target key end

     0   :  { %10 = vsyncpa [#allocation3], 0  ;;  %v46_v28 = vlaneseq  ;;  %v1071_v33 = vmov 1983009808   ;;  %v1072_v43 = vmov 0.0   ;;  %vm1073_vm0 = vmmov 0   ;;  %s1315_s0 = inlined_call_operand.vmem [shape: f32[2,784], index: 0, kind: input, shape index: {}]   ;;  %s1316_s1 = inlined_call_operand.vmem [shape: bf16[784,10], index: 1, kind: input, shape index: {}]   ;;  %s1317_s2 = inlined_call_operand.vmem [shape: f32[1,10], index: 2, kind: input, shape index: {}]   ;;  %s1318_s3 = inlined_call_operand.vmem [shape: bf16[10,10], index: 3, kind: input, shape index: {}]   ;;  %s1319_s4 = inlined_call_operand.vmem [shape: f32[1,10], index: 4, kind: input, shape index: {}]   ;;  %s1320_s5 = inlined_call_operand.hbm [shape: f32[2,10], index: 5, kind: output, shape index: {}]  }
   0x1   :  { %v981_v0 = vld [vmem:[%s1316_s1 + $0x40] sm:$0xff]   ;;  %v985_v4 = vld [vmem:[%s1316_s1 + $0x48] sm:$0xff]   ;;  %v989_v8 = vld [vmem:[%s1316_s1 + $0x50] sm:$0xff]   ;;  %v44_v34 = vunpack.c.l.s4 %v1071_v33  ;;  %vm523_vm1 = vcmask 130048   ;;  %vm707_vm2 = vcmask 1044480   ;;  %vm703_vm3 = vcmask 80896  }
   0x2   :  { %v982_v1 = vld [vmem:[%s1316_s1] sm:$0xff]   ;;  %883 = vmatprep.subr.bf16.mxu0 %v981_v0  ;;  %v986_v5 = vld [vmem:[%s1316_s1 + $0x8] sm:$0xff]   ;;  %v990_v9 = vld [vmem:[%s1316_s1 + $0x10] sm:$0xff]   ;;  %v47_v35 = vshrl.u32 %v46_v28, 7 }
   0x3   :  { %v983_v2 = vld [vmem:[%s1316_s1 + $0xc0] sm:$0xff]   ;;  %884 = vmatpush3.bf16.msra.mxu0 %v982_v1  ;;  %v987_v6 = vld [vmem:[%s1316_s1 + $0xc8] sm:$0xff]   ;;  %v991_v10 = vld [vmem:[%s1316_s1 + $0xd0] sm:$0xff]   ;;  %v45_v37 = vunpack.c.0.s8 %v44_v34 }
   0x4   :  { %v984_v3 = vld [vmem:[%s1316_s1 + $0x80] sm:$0xff]   ;;  %905 = vmatprep.subr.bf16.mxu1 %v983_v2  ;;  %885 = vmatprep.subr.bf16.mxu0 %v985_v4  ;;  %v988_v7 = vld [vmem:[%s1316_s1 + $0x88] sm:$0xff]   ;;  %v992_v11 = vld [vmem:[%s1316_s1 + $0x90] sm:$0xff]  }
   0x5   :  { %906 = vmatpush3.bf16.msra.mxu1 %v984_v3  ;;  %v993_v12 = vld [vmem:[%s1316_s1 + $0x58] sm:$0xff]   ;;  %v997_v16 = vld [vmem:[%s1316_s1 + $0x60] sm:$0xff]   ;;  %v1001_v20 = vld [vmem:[%s1316_s1 + $0x68] sm:$0xff]   ;;  %v48_v42 = vsub.s32 %v45_v37, %v47_v35 }
   0x6   :  { %907 = vmatprep.subr.bf16.mxu1 %v987_v6  ;;  %v994_v13 = vld [vmem:[%s1316_s1 + $0x18] sm:$0xff]   ;;  %v998_v17 = vld [vmem:[%s1316_s1 + $0x20] sm:$0xff]   ;;  %v1002_v21 = vld [vmem:[%s1316_s1 + $0x28] sm:$0xff]  }
   0x7   :  { %886 = vmatpush3.bf16.msra.mxu0 %v986_v5  ;;  %v995_v14 = vld [vmem:[%s1316_s1 + $0xd8] sm:$0xff]   ;;  %v999_v18 = vld [vmem:[%s1316_s1 + $0xe0] sm:$0xff]   ;;  %v1003_v22 = vld [vmem:[%s1316_s1 + $0xe8] sm:$0xff]  }
   0x8   :  { %887 = vmatprep.subr.bf16.mxu0 %v989_v8  ;;  %v996_v15 = vld [vmem:[%s1316_s1 + $0x98] sm:$0xff]   ;;  %v1000_v19 = vld [vmem:[%s1316_s1 + $0xa0] sm:$0xff]   ;;  %v1004_v23 = vld [vmem:[%s1316_s1 + $0xa8] sm:$0xff]  }
   0x9   :  { %908 = vmatpush3.bf16.msra.mxu1 %v988_v7  ;;  %v1005_v24 = vld [vmem:[%s1316_s1 + $0x70] sm:$0xff]   ;;  %v1009_v29 = vld [vmem:[%s1316_s1 + $0x78] sm:$0xff]   ;;  %v1017_v39 = vld [vmem:[%s1316_s1 + $0x140] sm:$0xff]  }
   0xa   :  { %909 = vmatprep.subr.bf16.mxu1 %v991_v10  ;;  %v1006_v25 = vld [vmem:[%s1316_s1 + $0x30] sm:$0xff]   ;;  %v1010_v30 = vld [vmem:[%s1316_s1 + $0x38] sm:$0xff]   ;;  %v1020_v55 = vld [vmem:[%s1316_s1 + $0x100] sm:$0xff]  }
   0xb   :  { %888 = vmatpush3.bf16.msra.mxu0 %v990_v9  ;;  %v1007_v26 = vld [vmem:[%s1316_s1 + $0xf0] sm:$0xff]   ;;  %v1011_v31 = vld [vmem:[%s1316_s1 + $0xf8] sm:$0xff]   ;;  %v1021_v57 = vld [vmem:[%s1316_s1 + $0x148] sm:$0xff]  }
   0xc   :  { %889 = vmatprep.subr.bf16.mxu0 %v993_v12  ;;  %v1008_v27 = vld [vmem:[%s1316_s1 + $0xb0] sm:$0xff]   ;;  %v1014_v36 = vld [vmem:[%s1315_s0 + $0x1c] ss:$14 sps:$4 sm:$0xff]   ;;  %v1035_v62 = vld [vmem:[%s1316_s1 + $0x180] sm:$0xff]  }
   0xd   :  { %910 = vmatpush3.bf16.msra.mxu1 %v992_v11  ;;  %v1012_v32 = vld [vmem:[%s1315_s0] ss:$14 sps:$4 sm:$0xff]   ;;  %v1016_v38 = vld [vmem:[%s1316_s1 + $0xb8] sm:$0xff]   ;;  %v1018_v40 = vld [vmem:[%s1315_s0 + $0x4] ss:$14 sps:$4 sm:$0xff]   ;;  %v63_v45 = vrot.slane %v1014_v36, %v48_v42 }
   0xe   :  { %911 = vmatprep.subr.bf16.mxu1 %v995_v14  ;;  %v1019_v41 = vld [vmem:[%s1315_s0 + $0x20] ss:$14 sps:$4 sm:$0xff]   ;;  %v49_v44 = vrot.slane %v1012_v32, %v48_v42  ;;  %v56_v46 = vrot.slane %v1018_v40, %v48_v42  ;;  %v1025_v61 = vld [vmem:[%s1316_s1 + $0x158] sm:$0xff]   ;;  %v1039_v1 = vld [vmem:[%s1315_s0 + $0x24] ss:$14 sps:$4 sm:$0xff]  }
   0xf   :  { %890 = vmatpush3.bf16.msra.mxu0 %v994_v13  ;;  %v70_v47 = vrot.slane %v1019_v41, %v48_v42  ;;  %v1022_v58 = vld [vmem:[%s1316_s1 + $0x108] sm:$0xff]   ;;  %v1023_v59 = vld [vmem:[%s1316_s1 + $0x150] sm:$0xff]   ;;  %v1026_v63 = vld [vmem:[%s1316_s1 + $0x118] sm:$0xff]   ;;  %v99_v6 = vrot.slane %v1039_v1, %v48_v42 }
  0x10   :  { %891 = vmatprep.subr.bf16.mxu0 %v997_v16  ;;  %v72_v48 = vcombine.high %v49_v44, %v63_v45  ;;  %v71_v49 = vcombine.low %v49_v44, %v63_v45  ;;  %v1024_v60 = vld [vmem:[%s1316_s1 + $0x110] sm:$0xff]   ;;  %v1038_v2 = vld [vmem:[%s1315_s0 + $0xc] ss:$14 sps:$4 sm:$0x33]   ;;  %v1027_v4 = vld [vmem:[%s1316_s1 + $0x160] sm:$0xff]  }
  0x11   :  { %912 = vmatpush3.bf16.msra.mxu1 %v996_v15  ;;  %v74_v50 = vcombine.high %v56_v46, %v70_v47  ;;  %v73_v51 = vcombine.low %v56_v46, %v70_v47  ;;  %v1036_v0 = vld [vmem:[%s1315_s0 + $0x8] ss:$14 sps:$4 sm:$0xff]   ;;  %v92_v7 = vrot.slane %v1038_v2, %v48_v42  ;;  %v1028_v10 = vld [vmem:[%s1316_s1 + $0x120] sm:$0xff]  }
  0x12   :  { %913 = vmatprep.subr.bf16.mxu1 %v999_v18  ;;  %v118_v52 = vpack.c.bf16 %v72_v48, %v72_v48  ;;  %v117_v53 = vpack.c.bf16 %v71_v49, %v71_v49  ;;  %v1041_v3 = vld [vmem:[%s1315_s0 + $0x28] ss:$14 sps:$4 sm:$0x33]   ;;  %v85_v5 = vrot.slane %v1036_v0, %v48_v42  ;;  %v1033_v18 = vld [vmem:[%s1316_s1 + $0x178] sm:$0xff]  }
  0x13   :  { %892 = vmatpush3.bf16.msra.mxu0 %v998_v17  ;;  %v120_v54 = vpack.c.bf16 %v74_v50, %v74_v50  ;;  %v119_v56 = vpack.c.bf16 %v73_v51, %v73_v51  ;;  %v106_v8 = vrot.slane %v1041_v3, %v48_v42  ;;  %v1029_v12 = vld [vmem:[%s1316_s1 + $0x168] sm:$0xff]   ;;  %v1031_v16 = vld [vmem:[%s1316_s1 + $0x170] sm:$0xff]   ;;  %v879_v51 = vld [vmem:[%s1319_s4] ss:$0 sm:$0xff] }
  0x14   :  { %893 = vmatprep.subr.bf16.mxu0 %v1001_v20  ;;  %559 = vmatprep.mubr.bf16.mxu0 %v118_v52  ;;  %v108_v9 = vcombine.high %v85_v5, %v99_v6  ;;  %v1030_v15 = vld [vmem:[%s1316_s1 + $0x128] sm:$0xff]   ;;  %v1032_v17 = vld [vmem:[%s1316_s1 + $0x130] sm:$0xff]   ;;  %v1034_v20 = vld [vmem:[%s1316_s1 + $0x138] sm:$0xff]  }
  0x15   :  { %914 = vmatpush3.bf16.msra.mxu1 %v1000_v19  ;;  %599 = vmatprep.mubr.bf16.mxu1 %v120_v54  ;;  %v109_v11 = vcombine.low %v92_v7, %v106_v8  ;;  %v107_v19 = vcombine.low %v85_v5, %v99_v6 }
  0x16   :  { %915 = vmatprep.subr.bf16.mxu1 %v1003_v22  ;;  %v122_v13 = vpack.c.bf16 %v108_v9, %v108_v9  ;;  %v1042_v22 = vld [vmem:[%s1318_s3] sm:$0x1f]  }
  0x17   :  { %894 = vmatpush3.bf16.msra.mxu0 %v1002_v21  ;;  %v123_v14 = vpack.c.bf16 %v109_v11, %v109_v11  ;;  %v121_v21 = vpack.c.bf16 %v107_v19, %v107_v19 }
  0x18   :  { %895 = vmatprep.subr.bf16.mxu0 %v1005_v24 }
  0x19   :  { %916 = vmatpush3.bf16.msra.mxu1 %v1004_v23  ;;  %v709_v23 = vsel %vm707_vm2, %v1042_v22, 0 }
  0x1a   :  { %917 = vmatprep.subr.bf16.mxu1 %v1007_v26  ;;  %v828_v26 = vld [vmem:[%s1317_s2] ss:$0 sm:$0xff] }
  0x1b   :  { %896 = vmatpush3.bf16.msra.mxu0 %v1006_v25 }
  0x1c   :  { %897 = vmatprep.subr.bf16.mxu0 %v1009_v29 }
  0x1d   :  { %918 = vmatpush3.bf16.msra.mxu1 %v1008_v27 }
  0x1e   :  { %919 = vmatprep.subr.bf16.mxu1 %v1011_v31 }
  0x1f   :  { %898 = vmatpush3.bf16.msra.mxu0 %v1010_v30 }
  0x20   :  { %927 = vmatprep.subr.bf16.mxu0 %v1017_v39 }
  0x21   :  { %920 = vmatpush3.bf16.msra.mxu1 %v1016_v38 }
  0x22   :  { %955 = vmatprep.subr.bf16.mxu1 %v1072_v43  ;;  %560 = vmatmul.mubr.bf16.vlgmr.msra.gmra.mrb[0].mxu0 %v117_v53 }
  0x23   :  { %928 = vmatpush3.bf16.msra.mxu0 %v1020_v55  ;;  %639 = vmatprep.mubr.bf16.mxu0 %v122_v13 }
  0x24   :  { %600 = vmatmul.mubr.bf16.vlgmr.msra.gmra.mrb[0].mxu1 %v119_v56  ;;  %929 = vmatprep.subr.bf16.mxu0 %v1021_v57 }
  0x25   :  { %957 = vmatprep.mubr.msk.bf16.mxu1 %vm1073_vm0, %v1072_v43  ;;  %956 = vmatpush3.bf16.msra.mxu1 %v1035_v62 }
  0x26   :  { %961 = vmatprep.subr.bf16.mxu1 %v1072_v43 }
  0x27   :  { %930 = vmatpush3.bf16.msra.mxu0 %v1022_v58  ;;  %v1074_v58 = vmov 0  }
  0x28   :  { %931 = vmatprep.subr.bf16.mxu0 %v1023_v59  ;;  %v762_v59 = vsel %vm707_vm2, 1065369472, %v1074_v58  ;;  %980 = vset.pattern.permute.xlu0 %v1074_v58 }
  0x2b   :  { %932 = vmatpush3.bf16.msra.mxu0 %v1024_v60 }
  0x2c   :  { %933 = vmatprep.subr.bf16.mxu0 %v1025_v61  ;;  %958 = vmatmul.mubr.msk.bf16.vlgmr.msra.gmra.mrb[4].mxu1 %vm523_vm1, %v123_v14 }
  0x2d   :  { %963 = vmatprep.mubr.msk.bf16.mxu1 %vm1073_vm0, %v1072_v43  ;;  %962 = vmatpush3.bf16.msra.mxu1 %v709_v23 }
  0x2e   :  { %967 = vmatprep.subr.bf16.mxu1 %v1072_v43 }
  0x2f   :  { %934 = vmatpush3.bf16.msra.mxu0 %v1026_v63 }
  0x30   :  { %935 = vmatprep.subr.bf16.mxu0 %v1027_v4 }
  0x33   :  { %936 = vmatpush3.bf16.msra.mxu0 %v1028_v10 }
  0x34   :  { %937 = vmatprep.subr.bf16.mxu0 %v1029_v12 }
  0x37   :  { %938 = vmatpush3.bf16.msra.mxu0 %v1030_v15 }
  0x38   :  { %939 = vmatprep.subr.bf16.mxu0 %v1031_v16 }
  0x3b   :  { %940 = vmatpush3.bf16.msra.mxu0 %v1032_v17 }
  0x3c   :  { %941 = vmatprep.subr.bf16.mxu0 %v1033_v18 }
  0x3f   :  { %942 = vmatpush3.bf16.msra.mxu0 %v1034_v20 }
  0x42   :  { %640 = vmatmul.mubr.bf16.vlgmr.msra.gmra.mrb[4].mxu0 %v121_v21 }
  0xf5   :  { %v899_v24 = vpop.f32.mrb[0].mxu0 }
  0xf6   :  { %v900_v27 = vpop.f32.mrb[1].mxu0 }
  0xf7   :  { %v921_v25 = vpop.f32.mrb[0].mxu1  ;;  %v901_v29 = vadd.f32 %v900_v27, %v899_v24  ;;  %v902_v30 = vpop.f32.mrb[2].mxu0 }
  0xf8   :  { %v922_v28 = vpop.f32.mrb[1].mxu1  ;;  %v903_v33 = vpop.f32.mrb[3].mxu0 }
  0xf9   :  { %v923_v31 = vadd.f32 %v922_v28, %v921_v25  ;;  %v924_v32 = vpop.f32.mrb[2].mxu1  ;;  %v562_v35 = vadd.f32 %v901_v29, %v828_v26 }
  0xfa   :  { %v925_v34 = vpop.f32.mrb[3].mxu1 }
  0xfb   :  { %v602_v36 = vadd.f32 %v923_v31, %v562_v35 }
  0xff   :  { %v681_v37 = vpop.f32.mrb[4].mxu1 }
 0x100   :  { %v959_v38 = vpop.f32.mrb[5].mxu1 }
 0x101   :  { %v684_v39 = vpop.f32.mrb[6].mxu1 }
 0x102   :  { %v960_v40 = vpop.f32.mrb[7].mxu1 }
 0x115   :  { %v943_v41 = vpop.f32.mrb[4].mxu0 }
 0x116   :  { %v944_v42 = vpop.f32.mrb[5].mxu0 }
 0x117   :  { %v945_v44 = vadd.f32 %v944_v42, %v943_v41  ;;  %v946_v45 = vpop.f32.mrb[6].mxu0 }
 0x118   :  { %v947_v46 = vpop.f32.mrb[7].mxu0 }
 0x119   :  { %v642_v47 = vadd.f32 %v945_v44, %v602_v36 }
 0x11b   :  { %v682_v48 = vadd.f32 %v681_v37, %v642_v47 }
 0x11d   :  { %v687_v49 = vmax.f32 %v682_v48, 0.0 }
 0x11f   :  { %v688_v50 = vpack.c.bf16 %v687_v49, %v687_v49 }
 0x121   :  { %964 = vmatmul.mubr.msk.bf16.vlgmr.msra.gmra.mrb[8].mxu1 %vm703_vm3, %v688_v50 }
 0x122   :  { %969 = vmatprep.mubr.msk.bf16.mxu1 %vm1073_vm0, %v1072_v43  ;;  %968 = vmatpush3.bf16.msra.mxu1 %v762_v59 }
 0x1f4   :  { %v745_v52 = vpop.f32.mrb[8].mxu1 }
 0x1f5   :  { %v746_v53 = vadd.f32 %v879_v51, %v745_v52  ;;  %v965_v54 = vpop.f32.mrb[9].mxu1 }
 0x1f6   :  { %v748_v55 = vpop.f32.mrb[10].mxu1 }
 0x1f7   :  { %v966_v56 = vpop.f32.mrb[11].mxu1  ;;  %v751_v57 = vsel %vm703_vm3, %v746_v53, -inf }
 0x1f8   :  { %752 = vmax.xlane.f32.xlu0 %v751_v57 }
 0x285   :  { %v753_v60 = vpop.xlane.xlu0 %752 }
 0x286   :  { %v754_v61 = vsub.f32 %v746_v53, %v753_v60 }
 0x288   :  { %v755_v43 = vmul.f32 1.442695, %v754_v61 }
 0x28a   :  { %1043 = vpow2.f32 %v755_v43 }
 0x294   :  { %v1044_v62 = vpop.eup %1043 }
 0x295   :  { %v757_v63 = vpack.c.bf16 %v1044_v62, %v1044_v62 }
 0x297   :  { %970 = vmatmul.mubr.msk.bf16.vlgmr.msra.gmra.mrb[12].mxu1 %vm703_vm3, %v757_v63 }
 0x36a   :  { %v798_v0 = vpop.f32.mrb[12].mxu1 }
 0x36b   :  { %1045 = vrcp.f32 %v798_v0  ;;  %v971_v1 = vpop.f32.mrb[13].mxu1 }
 0x36c   :  { %v801_v2 = vpop.f32.mrb[14].mxu1 }
 0x36d   :  { %v972_v3 = vpop.f32.mrb[15].mxu1 }
 0x375   :  { %v1046_v4 = vpop.eup %1045 }
 0x376   :  { %807 = vperm.xlu0 %980, %v1046_v4  }
 0x3f5   :  { %v808_v5 = vpop.permute.xlu0 %807 }
 0x3f6   :  { %v810_v6 = vmul.f32 %v1044_v62, %v808_v5 }
 0x3f8   :  { %811 = vst.msk [vmem:[#allocation2] sm:$0xff] %vm703_vm3, %v810_v6 }
 0x3f9   :  { %816 = vsyncadd [#allocation3], 96  ;;  %s1075_s3 = smov [#allocation2]  }
 0x3fa   :  { %s817_s4 = sshll.u32 %s1075_s3, 4  ;;  %s818_s4 = int_to_ptr.vmem [resolvable:$true] %s817_s4 }
 0x3fb   :  { %s1047_s10 = scalar_lea.vmem %s818_s4, 32  ;;  %s1051_s11 = scalar_lea.vmem %s818_s4, 128 }
 0x3fc   :  { %p1048_p0 = scmp.ne.s32.totalorder %s818_s4, %s1047_s10  ;;  %p1052_p1 = scmp.lt.s32.totalorder %s818_s4, %s818_s4 }
 0x3fd   :  { %p1053_p2 = scmp.lt.s32.totalorder %s1051_s11, %s1047_s10 }
 0x3ff   :  { %p1054_p3 = por %p1053_p2, %p1052_p1 }
 0x401   :  { %p1055_p4 = pnand %p1054_p3, %p1048_p0 }
 0x403   :  { %1058 = shalt.err (!%p1055_p4)
}
 0x404   :  { %s1059_s14 = scalar_lea.hbm %s1320_s5, 32 }
 0x405   :  { %p1060_p5 = scmp.ne.s32.totalorder %s1320_s5, %s1059_s14  ;;  %p1063_p6 = scmp.lt.u32.totalorder %s1059_s14, %s1320_s5 }
 0x407   :  { %p1065_p7 = pnand %p1063_p6, %p1060_p5 }
 0x409   :  { %1068 = shalt.err (!%p1065_p7)
}
 0x40a   :  { %s1076_s19 = smov 32   ;;  %s1077_s0 = smov 2  }
 0x40b   :  { %823 = dma.vmem_to_hbm [thread:$0]  %s818_s4, 32, %s1320_s5, [#allocation3], %s1076_s19, %s1076_s19, %s1077_s0  }
 0x40c   :  { %1069 = dma.done.wait [#allocation3], 128  }
 0x40d   :  { %1070 = vsyncadd [#allocation3], 4294967168 }
 0x40e   :  { %827 = vsyncpa [#allocation3], 1 }

</bundles_post_ra>
